<compile_context>
chip_gen: v5e
topology: v5e:2x2
jax: 0.10.0
libtpu: 0.0.40
codegen_flags: <defaults>
</compile_context>

<pallas_src>
import jax
import jax.numpy as jnp
from jax.experimental import pallas as pl
from jax.experimental.pallas import tpu as pltpu


def _round_up(x, m):
    return (x + m - 1) // m * m


def _weighted_l1_kernel(x_ref, t_ref, p_ref, wtab_ref, out_ref):
    x = x_ref[...].astype(jnp.float32)          # [TB, Np]
    t = t_ref[...].astype(jnp.float32)          # [TB, Np]
    p = p_ref[...].astype(jnp.float32)          # [TB, Mp]
    wtab = wtab_ref[...]                        # [1,  Kp]  (resident)

    tb = x.shape[0]
    kp = wtab.shape[1]

    # Per-row L1 *sum*; the 1/N (row mean) and 1/B (batch mean) scales are
    # folded into the wrapper's finalize step.
    row_sum = jnp.sum(jnp.abs(x - t), axis=1, keepdims=True)          # [TB, 1]

    # breaths_per_window = sum(peaks).long()  (truncation toward zero, matches
    # torch .long()).
    # TODO(synk): consider jnp.round if counts are meant to be exact integers
    # (float-sum truncation is boundary-fragile).
    breaths = jnp.sum(p, axis=1, keepdims=True).astype(jnp.int32)     # [TB, 1]

    # Dense-table lookup via masked compare:
    #   w = wtab[breath] if 0 <= breath < Kp else 1.0 (dict.get default)
    ks = jax.lax.broadcasted_iota(jnp.int32, (tb, kp), 1)             # [TB, Kp]
    match = (breaths == ks).astype(jnp.float32)                       # [TB, Kp]
    w_hit = jnp.sum(match * wtab, axis=1, keepdims=True)              # [TB, 1]
    has_hit = jnp.sum(match, axis=1, keepdims=True) > 0.0
    w = jnp.where(has_hit, w_hit, 1.0)                                # [TB, 1]

    # One partial sum per batch tile; summed + scaled in the wrapper.
    out_ref[0] = jnp.sum(row_sum * w, axis=0, keepdims=True)          # (1, 1)


def weighted_l1_loss(inp, target, peaks_prob_signal, weight_table,
                     *, block_batch=None, vmem_budget_bytes=8 * 1024 * 1024):
    """weight_table: 1-D f32 array; weight_table[k] == loss_weights.get(k, 1.0)."""
    B, N = inp.shape
    b_chk, M = peaks_prob_signal.shape
    assert b_chk == B and target.shape == (B, N)

    # --- lane-dense padding (last dims -> multiple of 128) -------------------
    n_pad = _round_up(N, 128)
    m_pad = _round_up(M, 128)

    wtab = weight_table.astype(jnp.float32).reshape(-1)
    k_pad = _round_up(wtab.shape[0], 128)
    # Pad with the default weight 1.0 so padded indices behave like a dict miss.
    wtab = jnp.pad(wtab, (0, k_pad - wtab.shape[0]), constant_values=1.0)
    wtab = wtab.reshape(1, k_pad)

    # --- batch tile: sublane multiple, capped by a VMEM budget ---------------
    sub = 16 if inp.dtype.itemsize == 2 else 8     # bf16 sublane packing
    if block_batch is None:
        # x + t + peaks rows, double-buffered pipeline, f32-conservative bytes.
        bytes_per_row = (2 * n_pad + m_pad) * 4 * 2
        tb = max(sub, (vmem_budget_bytes // bytes_per_row) // sub * sub)
        tb = min(tb, 512)
    else:
        tb = _round_up(max(block_batch, 1), sub)
    tb = min(tb, _round_up(B, sub))
    b_pad = _round_up(B, tb)
    grid = b_pad // tb

    def pad2(a, rows, cols):
        return jnp.pad(a, ((0, rows - a.shape[0]), (0, cols - a.shape[1])))

    x = pad2(inp, b_pad, n_pad)
    t = pad2(target, b_pad, n_pad)
    p = pad2(peaks_prob_signal, b_pad, m_pad)

    partials = pl.pallas_call(
        _weighted_l1_kernel,
        out_shape=jax.ShapeDtypeStruct((grid, 1, 1), jnp.float32),
        grid_spec=pltpu.PrefetchScalarGridSpec(
            num_scalar_prefetch=0,
            grid=(grid,),
            in_specs=[
                pl.BlockSpec((tb, n_pad), lambda i: (i, 0)),     # input tile
                pl.BlockSpec((tb, n_pad), lambda i: (i, 0)),     # target tile
                pl.BlockSpec((tb, m_pad), lambda i: (i, 0)),     # peaks tile
                pl.BlockSpec((1, k_pad), lambda i: (0, 0)),      # resident table
            ],
            out_specs=pl.BlockSpec((1, 1, 1), lambda i: (i, 0, 0)),
        ),
        compiler_params=pltpu.CompilerParams(
            dimension_semantics=("parallel",),   # per-tile partials -> race-free
            vmem_limit_bytes=32 * 1024 * 1024,
        ),
    )(x, t, p, wtab)

    # Zero-padded rows/cols contribute exactly 0, so divide by the true N * B.
    return jnp.sum(partials) * (1.0 / (float(N) * float(B)))


def build_weight_table(loss_weights, max_breaths=16):
    if loss_weights:
        assert min(loss_weights) >= 0 and max(loss_weights) < max_breaths, (
            "weight table must cover every key present in loss_weights")
    tab = [float(loss_weights.get(k, 1.0)) for k in range(max_breaths)]
    return jnp.asarray(tab, dtype=jnp.float32)


def _reference(inp, target, peaks, loss_weights):
    # Pure-JAX reference mirroring the torch module.
    l1 = jnp.mean(jnp.abs(inp.astype(jnp.float32) - target.astype(jnp.float32)),
                  axis=1)
    breaths = jnp.sum(peaks.astype(jnp.float32), axis=1).astype(jnp.int32)
    w = jnp.asarray([loss_weights.get(int(b), 1.0) for b in breaths],
                    dtype=jnp.float32)
    return jnp.mean(l1 * w)


if __name__ == "__main__":
    key = jax.random.PRNGKey(0)
    k1, k2, k3, k4, k5, k6 = jax.random.split(key, 6)

    loss_weights = {2: 2.0, 3: 0.5, 5: 1.5, 6: 3.0}
    wtab = build_weight_table(loss_weights, max_breaths=16)

    # Lane-aligned shapes; block_batch=8 -> 2-step pipelined grid.
    B, N, M = 16, 256, 128
    x = jax.random.normal(k1, (B, N), dtype=jnp.float32)
    t = jax.random.normal(k2, (B, N), dtype=jnp.float32)
    peaks = jax.random.uniform(k3, (B, M), dtype=jnp.float32) * 0.05  # counts ~2-4

    out = jax.block_until_ready(weighted_l1_loss(x, t, peaks, wtab, block_batch=8))
    ref = _reference(x, t, peaks, loss_weights)
    assert jnp.allclose(out, ref, rtol=1e-5, atol=1e-5), (out, ref)

    # Unaligned shapes exercise the zero-padding path.
    B2, N2, M2 = 6, 100, 37
    x2 = jax.random.normal(k4, (B2, N2), dtype=jnp.float32)
    t2 = jax.random.normal(k5, (B2, N2), dtype=jnp.float32)
    peaks2 = jax.random.uniform(k6, (B2, M2), dtype=jnp.float32) * 0.1  # counts ~1-2

    out2 = jax.block_until_ready(weighted_l1_loss(x2, t2, peaks2, wtab))
    ref2 = _reference(x2, t2, peaks2, loss_weights)
    assert jnp.allclose(out2, ref2, rtol=1e-5, atol=1e-5), (out2, ref2)

    print("KERNEL_OK")
</pallas_src>

<mosaic_0001>
module attributes {stable_mosaic.version = 11 : i64} {
  func.func @_weighted_l1_kernel(%arg0: i32, %arg1: memref<8x256xf32, #tpu.memory_space<vmem>>, %arg2: memref<8x256xf32, #tpu.memory_space<vmem>>, %arg3: memref<8x128xf32, #tpu.memory_space<vmem>>, %arg4: memref<1x128xf32, #tpu.memory_space<vmem>>, %arg5: memref<1x1x1xf32, #tpu.memory_space<vmem>>) attributes {dimension_semantics = [#tpu.dimension_semantics<parallel>], iteration_bounds = array<i64: 2>, scalar_prefetch = 0 : i64, scratch_operands = 0 : i64, tpu.core_type = #tpu.core_type<tc>, window_params = [{transform_indices = @transform_0, window_bounds = array<i64: 8, 256>}, {transform_indices = @transform_1, window_bounds = array<i64: 8, 256>}, {transform_indices = @transform_2, window_bounds = array<i64: 8, 128>}, {pipeline_mode = #tpu.pipeline_mode<synchronous>, transform_indices = @transform_3, window_bounds = array<i64: 1, 128>}, {transform_indices = @transform_4, window_bounds = array<i64: 1, 1, 1>}]} {
    %c0 = arith.constant 0 : index
    %c0_0 = arith.constant 0 : index
    %0 = vector.load %arg1[%c0, %c0_0] : memref<8x256xf32, #tpu.memory_space<vmem>>, vector<8x256xf32>
    %c0_1 = arith.constant 0 : index
    %c0_2 = arith.constant 0 : index
    %1 = vector.load %arg2[%c0_1, %c0_2] : memref<8x256xf32, #tpu.memory_space<vmem>>, vector<8x256xf32>
    %c0_3 = arith.constant 0 : index
    %c0_4 = arith.constant 0 : index
    %2 = vector.load %arg3[%c0_3, %c0_4] : memref<8x128xf32, #tpu.memory_space<vmem>>, vector<8x128xf32>
    %c0_5 = arith.constant 0 : index
    %c0_6 = arith.constant 0 : index
    %3 = vector.load %arg4[%c0_5, %c0_6] : memref<1x128xf32, #tpu.memory_space<vmem>>, vector<1x128xf32>
    %4 = arith.subf %0, %1 : vector<8x256xf32>
    %5 = math.absf %4 : vector<8x256xf32>
    %cst = arith.constant dense<0.000000e+00> : vector<8xf32>
    %6 = vector.multi_reduction <add>, %5, %cst [1] : vector<8x256xf32> to vector<8xf32>
    %7 = vector.shape_cast %6 : vector<8xf32> to vector<8x1xf32>
    %cst_7 = arith.constant dense<0.000000e+00> : vector<8xf32>
    %8 = vector.multi_reduction <add>, %2, %cst_7 [1] : vector<8x128xf32> to vector<8xf32>
    %9 = vector.shape_cast %8 : vector<8xf32> to vector<8x1xf32>
    %10 = arith.fptosi %9 : vector<8x1xf32> to vector<8x1xi32>
    %11 = tpu.iota {dimensions = array<i32: 1>} : vector<8x128xi32>
    %12 = vector.broadcast %10 : vector<8x1xi32> to vector<8x128xi32>
    %13 = arith.cmpi eq, %12, %11 : vector<8x128xi32>
    %14 = arith.extui %13 : vector<8x128xi1> to vector<8x128xi32>
    %15 = arith.sitofp %14 : vector<8x128xi32> to vector<8x128xf32>
    %16 = vector.broadcast %3 : vector<1x128xf32> to vector<8x128xf32>
    %17 = arith.mulf %15, %16 : vector<8x128xf32>
    %cst_8 = arith.constant dense<0.000000e+00> : vector<8xf32>
    %18 = vector.multi_reduction <add>, %17, %cst_8 [1] : vector<8x128xf32> to vector<8xf32>
    %19 = vector.shape_cast %18 : vector<8xf32> to vector<8x1xf32>
    %cst_9 = arith.constant dense<0.000000e+00> : vector<8xf32>
    %20 = vector.multi_reduction <add>, %15, %cst_9 [1] : vector<8x128xf32> to vector<8xf32>
    %21 = vector.shape_cast %20 : vector<8xf32> to vector<8x1xf32>
    %cst_10 = arith.constant 0.000000e+00 : f32
    %22 = vector.broadcast %cst_10 : f32 to vector<8x1xf32>
    %23 = arith.cmpf ogt, %21, %22 : vector<8x1xf32>
    %cst_11 = arith.constant 1.000000e+00 : f32
    %24 = vector.broadcast %cst_11 : f32 to vector<8x1xf32>
    %25 = arith.select %23, %19, %24 : vector<8x1xi1>, vector<8x1xf32>
    %26 = arith.mulf %7, %25 : vector<8x1xf32>
    %cst_12 = arith.constant dense<0.000000e+00> : vector<1xf32>
    %27 = vector.multi_reduction <add>, %26, %cst_12 [0] : vector<8x1xf32> to vector<1xf32>
    %28 = vector.shape_cast %27 : vector<1xf32> to vector<1x1xf32>
    %c0_13 = arith.constant 0 : index
    %c0_14 = arith.constant 0 : index
    %c0_15 = arith.constant 0 : index
    %29 = vector.load %arg5[%c0_13, %c0_14, %c0_15] : memref<1x1x1xf32, #tpu.memory_space<vmem>>, vector<1x1x1xf32>
    %30 = vector.shape_cast %29 : vector<1x1x1xf32> to vector<1x1xf32>
    %31 = vector.shape_cast %28 : vector<1x1xf32> to vector<1x1x1xf32>
    tpu.vector_store %arg5[%c0_13, %c0_14, %c0_15], %31 {strides = array<i32>} : memref<1x1x1xf32, #tpu.memory_space<vmem>>, vector<1x1x1xf32>,
    return
  }
  func.func @transform_0(%arg0: i32) -> (i32, i32) {
    %c0_i32 = arith.constant 0 : i32
    %c0_i32_0 = arith.constant 0 : i32
    return %arg0, %c0_i32 : i32, i32
  }
  func.func @transform_1(%arg0: i32) -> (i32, i32) {
    %c0_i32 = arith.constant 0 : i32
    %c0_i32_0 = arith.constant 0 : i32
    return %arg0, %c0_i32 : i32, i32
  }
  func.func @transform_2(%arg0: i32) -> (i32, i32) {
    %c0_i32 = arith.constant 0 : i32
    %c0_i32_0 = arith.constant 0 : i32
    return %arg0, %c0_i32 : i32, i32
  }
  func.func @transform_3(%arg0: i32) -> (i32, i32) {
    %c0_i32 = arith.constant 0 : i32
    %c0_i32_0 = arith.constant 0 : i32
    %c0_i32_1 = arith.constant 0 : i32
    return %c0_i32, %c0_i32_0 : i32, i32
  }
  func.func @transform_4(%arg0: i32) -> (i32, i32, i32) {
    %c0_i32 = arith.constant 0 : i32
    %c0_i32_0 = arith.constant 0 : i32
    %c0_i32_1 = arith.constant 0 : i32
    return %arg0, %c0_i32, %c0_i32_0 : i32, i32, i32
  }
}

</mosaic_0001>

<bundles_post_ra>
// kernel: tpu_custom_call.1
= control target key start
LH: loop header
LB: loop body
LE: loop exit
PB: predicated region body
PF: predicated region fallthrough
CT: control target
= control target key end

     0   :  { %9 = vsyncpa [#allocation3], 0  ;;  %s808_s0 = inlined_call_operand.hbm [shape: f32[16,256], index: 0, kind: input, shape index: {}]   ;;  %s809_s1 = inlined_call_operand.hbm [shape: f32[16,256], index: 1, kind: input, shape index: {}]   ;;  %s810_s2 = inlined_call_operand.hbm [shape: f32[16,128], index: 2, kind: input, shape index: {}]   ;;  %s811_s3 = inlined_call_operand.vmem [shape: f32[1,128], index: 3, kind: input, shape index: {}]   ;;  %s812_s4 = inlined_call_operand.vmem [shape: f32[2,1,1], index: 4, kind: output, shape index: {}]  }
   0x1   :  { %11 = vsyncpa [#allocation3 + $0x1], 0 }
   0x2   :  { %12 = vsyncpa [#allocation5], 0 }
   0x3   :  { %14 = vsyncpa [#allocation5 + $0x1], 0  ;;  %s664_s15 = smov 0   ;;  %s666_s16 = smov 0  }
   0x4   :  { %s668_s17 = smov 0   ;;  %s670_s18 = smov 0  }
   0x5 LB: > { %s683_s19 = sadd.s32 4294967295, %s636_s18   ;;  %s686_s20 = sadd.s32 1, %s636_s18   ;;  %s636_s18 = sphi %s670_s18, %s819_s18   ;;  %s632_s17 = sphi %s668_s17, %s818_s17   ;;  %s628_s16 = sphi %s666_s16, %s817_s16   ;;  %s624_s15 = sphi %s664_s15, %s816_s15  }
   0x6   : > { %s24_s21 = ssub.s32 %s636_s18, %s686_s20  ;;  %s27_s22 = sadd.s32 1, %s632_s17 }
   0x7   : > { %p25_p0 = scmp.eq.s32.totalorder %s24_s21, 0  ;;  %p34_p1 = scmp.ne.s32.totalorder %s632_s17, %s628_s16 }
   0x8   : > { %p35_p2 = scmp.eq.s32.totalorder %s636_s18, 0  ;;  %p40_p3 = scmp.ne.s32.totalorder %s628_s16, %s624_s15 }
   0x9   : > { %s696_s23 = scalar_select %p25_p0, %s632_s17, %s27_s22  }
   0xa   : > { %p36_p4 = por %p35_p2, %p34_p1  ;;  %p41_p5 = scmp.eq.s32.totalorder %s683_s19, 0 }
   0xb   : > { %p473_p6 = scmp.lt.s32.totalorder %s636_s18, 2  ;;  %s705_s25 = sand.u32 1, %s632_s17  }
   0xc   : > { %p700_p7 = por %p41_p5, %p40_p3  ;;  %s435_s26 = sshll.u32 %s705_s25, 4 }
   0xd   : > { %s450_s27 = sshll.u32 %s636_s18, 4  ;;  %p709_p8 = pnand %p473_p6, %p36_p4 }
   0xe   : > { %s186_s29 = sand.u32 1, %s636_s18   ;;  %s195_s6 = scalar_lea.hbm %s809_s1, %s450_s27 }
   0xf   : > { %s197_s7 = sshll.u32 %s195_s6, 4  ;;  %s190_s8 = scalar_lea.vmem [#allocation4], %s435_s26  ;;  %s198_s7 = int_to_ptr.hbm [resolvable:$true] %s197_s7 }
  0x10   : > { %s199_s9 = sshll.u32 %s190_s8, 4  ;;  %s719_s10 = scalar_lea.sflag [#allocation5], %s186_s29  ;;  %s200_s9 = int_to_ptr.vmem [resolvable:$true] %s199_s9 }
  0x11   : > { %s508_s11 = sshra.s32 %s198_s7, 4  ;;  %p512_p10 = pneg %p709_p8  ;;  %s509_s11 = int_to_ptr.hbm [resolvable:$true] %s508_s11 }
  0x12   : > { %s510_s12 = scalar_lea.hbm %s509_s11, 16  ;;  %s515_s15 = scalar_lea.hbm %s809_s1, 32 }
  0x13   : > { %p511_p9 = scmp.ne.s32.totalorder %s509_s11, %s510_s12  ;;  %p516_p13 = scmp.lt.s32.totalorder %s509_s11, %s809_s1 }
  0x14   : > { %p517_p0 = scmp.lt.s32.totalorder %s515_s15, %s510_s12 }
  0x15   : > { %p513_p11 = pnand %p512_p10, %p511_p9 }
  0x16   : > { %p518_p1 = por %p517_p0, %p516_p13 }
  0x17   : > { %p514_p12 = pneg %p513_p11 }
  0x19   : > { %p519_p2 = pnand %p518_p1, %p514_p12 }
  0x1b   : > { %522 = shalt.err (!%p519_p2)
}
  0x1c   : > { %469 = dma.hbm_to_vmem [thread:$0]  (!%p709_p8), %s198_s7, 256, %s200_s9, %s719_s10  }
  0x1d   : > { %p443_p3 = scmp.ge.s32.totalorder %s636_s18, 1  ;;  %p223_p4 = scmp.lt.s32.totalorder %s636_s18, 3 }
  0x1e   : > { %s175_s6 = scalar_lea.hbm %s808_s0, %s450_s27  ;;  %s170_s11 = scalar_lea.vmem [#allocation2], %s435_s26 }
  0x1f   : > { %p737_p5 = pnand %p443_p3, %p223_p4  ;;  %s177_s8 = sshll.u32 %s175_s6, 4  ;;  %s178_s8 = int_to_ptr.hbm [resolvable:$true] %s177_s8 }
  0x20   : > { %s179_s12 = sshll.u32 %s170_s11, 4  ;;  %s167_s13 = scalar_lea.sflag [#allocation3], %s705_s25  ;;  %s180_s12 = int_to_ptr.vmem [resolvable:$true] %s179_s12 }
  0x21   : > { %s538_s14 = sshra.s32 %s178_s8, 4  ;;  %s545_s21 = scalar_lea.hbm %s808_s0, 32  ;;  %s539_s14 = int_to_ptr.hbm [resolvable:$true] %s538_s14 }
  0x22   : > { %s540_s7 = scalar_lea.hbm %s539_s14, 16  ;;  %p546_p12 = scmp.lt.s32.totalorder %s539_s14, %s808_s0 }
  0x23   : > { %p541_p6 = scmp.ne.s32.totalorder %s539_s14, %s540_s7  ;;  %p547_p13 = scmp.lt.s32.totalorder %s545_s21, %s540_s7 }
  0x25   : > { %p543_p9 = pnand %p541_p6, %p512_p10  ;;  %p548_p0 = por %p547_p13, %p546_p12 }
  0x27   : > { %p544_p11 = pneg %p543_p9 }
  0x29   : > { %p549_p1 = pnand %p548_p0, %p544_p11 }
  0x2b   : > { %552 = shalt.err (!%p549_p1)
}
  0x2c   : > { %466 = dma.hbm_to_vmem [thread:$0]  (!%p709_p8), %s178_s8, 256, %s180_s12, %s167_s13  }
  0x2d   : > { %s441_s26 = sshll.u32 %s705_s25, 3  ;;  %s442_s30 = sshll.u32 %s636_s18, 3 }
  0x2e   : > { %s214_s11 = scalar_lea.hbm %s810_s2, %s442_s30  ;;  %s210_s15 = scalar_lea.vmem [#allocation6], %s441_s26 }
  0x2f   : > { %s216_s9 = sshll.u32 %s214_s11, 4  ;;  %s218_s27 = sshll.u32 %s210_s15, 4  ;;  %s217_s9 = int_to_ptr.hbm [resolvable:$true] %s216_s9  ;;  %s219_s27 = int_to_ptr.vmem [resolvable:$true] %s218_s27 }
  0x30   : > { %s568_s14 = sshra.s32 %s217_s9, 4  ;;  %s575_s18 = scalar_lea.hbm %s810_s2, 16  ;;  %s569_s14 = int_to_ptr.hbm [resolvable:$true] %s568_s14 }
  0x31   : > { %s570_s7 = scalar_lea.hbm %s569_s14, 8  ;;  %p576_p6 = scmp.lt.s32.totalorder %s569_s14, %s810_s2 }
  0x32   : > { %p571_p2 = scmp.ne.s32.totalorder %s569_s14, %s570_s7  ;;  %p577_p9 = scmp.lt.s32.totalorder %s575_s18, %s570_s7 }
  0x34   : > { %p573_p3 = pnand %p571_p2, %p512_p10  ;;  %p578_p11 = por %p577_p9, %p576_p6 }
  0x36   : > { %p574_p4 = pneg %p573_p3 }
  0x38   : > { %p579_p12 = pnand %p578_p11, %p574_p4 }
  0x3a   : > { %582 = shalt.err (!%p579_p12)
}
  0x3b   : > { %472 = dma.hbm_to_vmem [thread:$0]  (!%p709_p8), %s217_s9, 128, %s219_s27, %s719_s10  }
  0x3c   : > { %227 = sbr.rel (%p737_p5) target bundleno = 336 (0x150), region = 36  ;;  %s229_s21 = sand.u32 (!%p737_p5), 1, %s628_s16  }
  0x3d   : > { %s444_s22 = sshll.u32 (!%p737_p5), %s229_s21, 4  ;;  %s230_s26 = scalar_lea.sflag (!%p737_p5), [#allocation3], %s229_s21 }
  0x3e   : > { %s233_s30 = scalar_lea.vmem (!%p737_p5), [#allocation2], %s444_s22 }
  0x41   : > { %615 = dma.done.wait (%p700_p7), %s230_s26, 256  }
  0x42   : > { %617 = vsyncadd (%p700_p7), %s230_s26, 4294967040  ;;  %s239_s5 = sand.u32 1, %s683_s19   ;;  %s243_s6 = scalar_lea.vmem [#allocation4], %s444_s22 }
  0x43   : > { %s240_s28 = scalar_lea.sflag [#allocation5], %s239_s5 }
  0x44   : > { %619 = dma.done.wait (%p700_p7), %s240_s28, 384  }
  0x45   : > { %621 = vsyncadd (%p700_p7), %s240_s28, 4294966912  ;;  %s446_s10 = sshll.u32 %s229_s21, 3  ;;  %v306_v1 = vlaneseq  ;;  %v290_v6 = vld [vmem:[%s233_s30] sm:$0xff]  ;;  %v291_v8 = vld [vmem:[%s233_s30 + $0x8] sm:$0xff]  ;;  %v638_v15 = vmov 0.0   ;;  %p287_p7 = scmp.lt.s32.totalorder %s683_s19, 1 }
  0x46   : > { %s253_s29 = scalar_lea.vmem [#allocation6], %s446_s10  ;;  %v292_v9 = vld [vmem:[%s243_s6] sm:$0xff]  ;;  %v293_v10 = vld [vmem:[%s243_s6 + $0x8] sm:$0xff]  ;;  %vm328_vm3 = vcmask 0  }
  0x47   : > { %v294_v0 = vld [vmem:[%s253_s29] sm:$0xff]  ;;  %v307_v5 = vand.u32 127, %v306_v1  ;;  %v296_v13 = vsub.f32 %v290_v6, %v292_v9  ;;  %v297_v14 = vsub.f32 %v291_v8, %v293_v10  ;;  %s821_s19 = smov (!%p287_p7, %s683_s19), 1 }
  0x48   : > { %303 = vadd.xlane.f32.xlu0 %v294_v0  ;;  %v507_v12 = vld [vmem:[%s811_s3] ss:$0 sm:$0xff]  ;;  %s289_s27 = scalar_lea.vmem %s812_s4, %s821_s19 }
  0x49   : > { %v298_v18 = vand.u32 2147483647, %v296_v13  ;;  %v299_v19 = vand.u32 2147483647, %v297_v14 }
  0x4b   : > { %v300_v20 = vadd.f32 %v299_v19, %v298_v18 }
  0xbb   : > { %v304_v2 = vpop.xlane.xlu0 %303 }
  0xbc   : > { %vm452_vm0 = vcmp.lt.s32.totalorder %v304_v2, 0  ;;  %v453_v3 = vceil.f32 %v304_v2  ;;  %v454_v4 = vfloor.f32 %v304_v2 }
  0xbe   : > { %v455_v7 = vsel %vm452_vm0, %v453_v3, %v454_v4 }
  0xbf   : > { %v456_v11 = vcvt.f32.s32 %v455_v7 }
  0xc1   : > { %vm308_vm1 = vcmp.eq.s32.totalorder %v456_v11, %v307_v5 }
  0xc2   : > { %v447_v16 = vsel %vm308_vm1, 1.0, %v638_v15 }
  0xc3   : > { %317 = vadd.xlane.f32.xlu0 %v447_v16  ;;  %v314_v17 = vmul.f32 %v507_v12, %v447_v16 }
  0xc5   : > { %315 = vadd.xlane.f32.xlu1 %v314_v17 }
  0xcd   : > { %301 = vadd.xlane.f32.xlu1 %v300_v20 }
 0x136   : > { %v318_v22 = vpop.xlane.xlu0 %317 }
 0x137   : > { %vm319_vm2 = vcmp.gt.f32.partialorder %v318_v22, 0.0 }
 0x138   : > { %v316_v21 = vpop.xlane.xlu1 %315 }
 0x139   : > { %v320_v23 = vsel %vm319_vm2, %v316_v21, 1.0 }
 0x140   : > { %v302_v24 = vpop.xlane.xlu1 %301 }
 0x141   : > { %v321_v25 = vmul.f32 %v320_v23, %v302_v24 }
 0x143   : > { %v322_v26 = vrot.slane %v321_v25, 4 }
 0x145   : > { %v323_v27 = vadd.f32 %v322_v26, %v321_v25 }
 0x147   : > { %v324_v28 = vrot.slane %v323_v27, 2 }
 0x149   : > { %v325_v29 = vadd.f32 %v324_v28, %v323_v27 }
 0x14b   : > { %v326_v30 = vrot.slane %v325_v29, 1 }
 0x14d   : > { %v327_v31 = vadd.f32 %v326_v30, %v325_v29 }
 0x14f   : > { %329 = vst.msk [vmem:[%s289_s27] sm:$0x1] %vm328_vm3, %v327_v31 }
 0x150 PF: > { %p17_p8 = scmp.ge.s32.totalorder %s686_s20, 4   ;;  %s816_s15 = smov %s628_s16 }
 0x151   : > { %s817_s16 = smov %s632_s17  ;;  %s818_s17 = smov %s696_s23 }
 0x152   : > { %s819_s18 = smov %s686_s20  ;;  %19 = sbr.rel (!%p17_p8) target bundleno = 5 (0x5), region = 100 }
 0x157   :  { %347 = vsyncpa [#allocation3], 1 }
 0x158   :  { %349 = vsyncpa [#allocation3 + $0x1], 1 }
 0x159   :  { %350 = vsyncpa [#allocation5], 1 }
 0x15a   :  { %352 = vsyncpa [#allocation5 + $0x1], 1 }

</bundles_post_ra>
